<compile_context>
chip_gen: v7x
topology: tpu7x:2x2x1
jax: 0.10.0
libtpu: 0.0.40
codegen_flags: <defaults>
</compile_context>

<pallas_src>
import functools

import jax
import jax.numpy as jnp
from jax.experimental import pallas as pl
from jax.experimental.pallas import tpu as pltpu

F = 128  # padded feature width (lane count); all hidden dims (64/32/16) <= 128


def _round_up(x, m):
    return (x + m - 1) // m * m


def _critic_kernel(s_ref, a_ref, w1s_ref, w1a_ref, p_ref, out_ref):
    """One grid step: (TB, sd) + (TB, ad) batch tiles -> (TB, 1) Q values.

    p_ref row layout (all zero-padded to F = 128 lanes):
      [0      : F  ]   W2 padded to (F, F)   (real block at [:64, :32])
      [F      : 2F ]   W3 padded to (F, F)   (real block at [:32, :16])
      [2F + 0]         b1 = concat(b1_state, b1_action)
      [2F + 1]         b2
      [2F + 2]         b3
      [2F + 3]         fc4 weight as a row
      [2F + 4, 0]      fc4 bias scalar
    """
    f32 = jnp.float32

    s = s_ref[...]                           # (TB, sd)  activation dtype (bf16/f32)
    a = a_ref[...]                           # (TB, ad)
    w1s = w1s_ref[...]                       # (sd, F)   lanes [0:32] live
    w1a = w1a_ref[...]                       # (ad, F)   lanes [32:64] live

    w2 = p_ref[0:F, :]                       # (F, F) f32
    w3 = p_ref[F:2 * F, :]                   # (F, F) f32
    b1 = p_ref[2 * F + 0:2 * F + 1, :]       # (1, F)
    b2 = p_ref[2 * F + 1:2 * F + 2, :]       # (1, F)
    b3 = p_ref[2 * F + 2:2 * F + 3, :]       # (1, F)
    w4 = p_ref[2 * F + 3:2 * F + 4, :]       # (1, F)
    b4 = p_ref[2 * F + 4:2 * F + 5, 0:1]     # (1, 1)

    # fc1_state ++ fc1_action fused: two MXU dots into disjoint lane bands
    # (== (state || action) @ blockdiag(W1s, W1a)), f32 accumulation.
    h1 = (jnp.dot(s, w1s, preferred_element_type=f32)
          + jnp.dot(a, w1a, preferred_element_type=f32))
    a1 = jnp.maximum(h1 + b1, 0.0)                                            # (TB, F)
    # fc2 + ReLU (padded lanes stay exactly 0: zero weight rows/cols, zero bias)
    a2 = jnp.maximum(jnp.dot(a1, w2, preferred_element_type=f32) + b2, 0.0)   # (TB, F)
    # fc3 + ReLU
    a3 = jnp.maximum(jnp.dot(a2, w3, preferred_element_type=f32) + b3, 0.0)   # (TB, F)
    # fc4 (out width 1): VPU multiply + XLU lane reduce instead of an N=1 matmul.
    q = jnp.sum(a3 * w4, axis=-1, keepdims=True) + b4                          # (TB, 1)

    # TODO(synk): if profiles ever show vst.msk writeback cost, relayout q into a
    # lane-dense (TB/128, 128) block here and reshape in the wrapper.
    out_ref[...] = q.astype(out_ref.dtype)


def _pack_params(params, activation_dtype):
    """Pack Critic parameters into three zero-padded slabs.

    Sizes are derived from the parameter shapes (no hardcoded split points).
    The fc1 weight slabs are stored in `activation_dtype` (MXU operand dtype);
    W2/W3/biases/fc4 stay f32.
    """
    f32 = jnp.float32
    w1s, b1s = params["fc1_state"]
    w1a, b1a = params["fc1_action"]
    w2, b2 = params["fc2"]
    w3, b3 = params["fc3"]
    w4, b4 = params["fc4"]

    sd, h1s = w1s.shape
    ad, h1a = w1a.shape
    h1 = h1s + h1a
    h2 = w2.shape[1]
    h3 = w3.shape[1]
    assert w2.shape[0] == h1 and w3.shape[0] == h2 and w4.shape == (h3, 1)
    assert h1 <= F and h2 <= F and h3 <= F

    # fc1 weights padded to F output lanes: state feeds lanes [0:h1s], action
    # feeds lanes [h1s:h1].  Two dots on these == the fused block-diagonal
    # matmul on the concatenated input (which we no longer materialize).
    w1s_pad = jnp.zeros((sd, F), activation_dtype).at[:, :h1s].set(
        w1s.astype(activation_dtype))
    w1a_pad = jnp.zeros((ad, F), activation_dtype).at[:, h1s:h1].set(
        w1a.astype(activation_dtype))

    pslab = jnp.zeros((2 * F + 8, F), f32)
    pslab = pslab.at[0:h1, 0:h2].set(w2.astype(f32))
    pslab = pslab.at[F:F + h2, 0:h3].set(w3.astype(f32))
    pslab = pslab.at[2 * F + 0, 0:h1].set(jnp.concatenate([b1s, b1a]).astype(f32))
    pslab = pslab.at[2 * F + 1, 0:h2].set(b2.astype(f32))
    pslab = pslab.at[2 * F + 2, 0:h3].set(b3.astype(f32))
    pslab = pslab.at[2 * F + 3, 0:h3].set(w4[:, 0].astype(f32))
    pslab = pslab.at[2 * F + 4, 0].set(b4[0].astype(f32))

    return w1s_pad, w1a_pad, pslab, (h1s, h1a, h2, h3)


def critic_forward(state, action, params, *, block_b=8192,
                   activation_dtype=jnp.bfloat16):
    """Pallas implementation of Critic.forward([state, action]) -> (B, 1)."""
    B, sd = state.shape
    ad = action.shape[1]

    if activation_dtype is None:
        activation_dtype = state.dtype
    activation_dtype = jnp.dtype(activation_dtype)

    w1s_pad, w1a_pad, pslab, (h1s, h1a, h2, h3) = _pack_params(
        params, activation_dtype)

    # bf16 activations halve the dominant input HBM stream and VMEM tile; in a
    # full DDPG graph this cast fuses into the producer of state/action.
    # Post-matmul math in the kernel stays f32 (important on v5e: no bf16 VPU).
    state = state.astype(activation_dtype)
    action = action.astype(activation_dtype)

    # Batch tiling: no wrapper-side pad or concat.
    #  * B <= block_b : one full-extent tile (full-dim block, no 8-row rule).
    #  * B >  block_b : cdiv grid; ragged edge tile is read-padded/write-masked.
    # block_b = 8192 keeps per-step VMEM (double-buffered inputs + (tb,128) f32
    # temporaries) ~12-16 MiB — inside v7x's 32 MiB scoped default — and yields
    # >= 2 "parallel" steps (both v7x TensorCores) as soon as B > block_b.
    block_b = max(8, _round_up(block_b, 8))
    if B <= block_b:
        tb = B
        grid = (1,)
    else:
        tb = block_b
        grid = (pl.cdiv(B, tb),)

    act_bytes = jnp.dtype(state.dtype).itemsize
    flops = 2 * B * (sd * h1s + ad * h1a + (h1s + h1a) * h2 + h2 * h3 + h3)
    bytes_accessed = (B * (sd + ad) * act_bytes            # activations in
                      + B * 4                              # Q values out
                      + (w1s_pad.size + w1a_pad.size) * act_bytes
                      + pslab.size * 4)                    # resident weights

    out = pl.pallas_call(
        _critic_kernel,
        out_shape=jax.ShapeDtypeStruct((B, 1), jnp.float32),
        grid=grid,
        in_specs=[
            pl.BlockSpec((tb, sd), lambda i: (i, 0)),        # state batch tile
            pl.BlockSpec((tb, ad), lambda i: (i, 0)),        # action batch tile
            pl.BlockSpec((sd, F), lambda i: (0, 0)),         # fc1_state W (resident)
            pl.BlockSpec((ad, F), lambda i: (0, 0)),         # fc1_action W (resident)
            pl.BlockSpec((2 * F + 8, F), lambda i: (0, 0)),  # W2/W3/biases/fc4 slab
        ],
        out_specs=pl.BlockSpec((tb, 1), lambda i: (i, 0)),
        compiler_params=pltpu.CompilerParams(
            dimension_semantics=("parallel",),
        ),
        cost_estimate=pl.CostEstimate(
            flops=int(flops),
            transcendentals=0,
            bytes_accessed=int(bytes_accessed),
        ),
    )(state, action, w1s_pad, w1a_pad, pslab)

    return out


def init_critic_params(key, state_dim, action_dim):
    """Deterministic init mimicking PyTorch nn.Linear defaults.
    Weights stored as (in_features, out_features)."""
    def linear(k, fan_in, fan_out):
        kw, kb = jax.random.split(k)
        bound = 1.0 / jnp.sqrt(jnp.float32(fan_in))
        w = jax.random.uniform(kw, (fan_in, fan_out), jnp.float32, -bound, bound)
        b = jax.random.uniform(kb, (fan_out,), jnp.float32, -bound, bound)
        return w, b

    k1, k2, k3, k4, k5 = jax.random.split(key, 5)
    return {
        "fc1_state": linear(k1, state_dim, 32),
        "fc1_action": linear(k2, action_dim, 32),
        "fc2": linear(k3, 64, 32),
        "fc3": linear(k4, 32, 16),
        "fc4": linear(k5, 16, 1),
    }


def critic_ref(state, action, params):
    """Pure-JAX f32 reference for correctness checking."""
    w1s, b1s = params["fc1_state"]
    w1a, b1a = params["fc1_action"]
    w2, b2 = params["fc2"]
    w3, b3 = params["fc3"]
    w4, b4 = params["fc4"]
    x = jax.nn.relu(state @ w1s + b1s)
    a = jax.nn.relu(action @ w1a + b1a)
    h = jnp.concatenate([x, a], axis=1)
    h = jax.nn.relu(h @ w2 + b2)
    h = jax.nn.relu(h @ w3 + b3)
    return h @ w4 + b4


if __name__ == "__main__":
    B, STATE_DIM, ACTION_DIM = 8, 16, 4

    key = jax.random.PRNGKey(0)
    k_params, k_state, k_action = jax.random.split(key, 3)

    params = init_critic_params(k_params, STATE_DIM, ACTION_DIM)
    state = jax.random.normal(k_state, (B, STATE_DIM), jnp.float32)
    action = jax.random.normal(k_action, (B, ACTION_DIM), jnp.float32)

    fwd = jax.jit(critic_forward,
                  static_argnames=("block_b", "activation_dtype"))

    ref = critic_ref(state, action, params)

    # Exact f32 path (verifies fused fc1 / padding propagation / fc4 reduce).
    out_f32 = jax.block_until_ready(
        fwd(state, action, params, activation_dtype=jnp.float32))
    assert out_f32.shape == (B, 1), out_f32.shape
    assert jnp.allclose(out_f32, ref, atol=1e-5, rtol=1e-5), (out_f32, ref)

    # Default bf16-input path (MXU-native operands, f32 accumulation).
    out_bf16 = jax.block_until_ready(fwd(state, action, params))
    assert out_bf16.shape == (B, 1), out_bf16.shape
    assert jnp.allclose(out_bf16, ref, atol=5e-2, rtol=5e-2), (out_bf16, ref)

    # Ragged batch (B not a multiple of 8): single full-extent tile, no pad op.
    B2 = 50
    state2 = jax.random.normal(jax.random.PRNGKey(1), (B2, STATE_DIM), jnp.float32)
    action2 = jax.random.normal(jax.random.PRNGKey(2), (B2, ACTION_DIM), jnp.float32)
    out2 = jax.block_until_ready(
        fwd(state2, action2, params, activation_dtype=jnp.float32))
    ref2 = critic_ref(state2, action2, params)
    assert out2.shape == (B2, 1), out2.shape
    assert jnp.allclose(out2, ref2, atol=1e-5, rtol=1e-5)

    # Multi-step batch grid with a masked ragged edge tile (no wrapper pad).
    B3 = 300
    state3 = jax.random.normal(jax.random.PRNGKey(3), (B3, STATE_DIM), jnp.float32)
    action3 = jax.random.normal(jax.random.PRNGKey(4), (B3, ACTION_DIM), jnp.float32)
    out3 = jax.block_until_ready(
        fwd(state3, action3, params, block_b=128, activation_dtype=jnp.float32))
    ref3 = critic_ref(state3, action3, params)
    assert out3.shape == (B3, 1), out3.shape
    assert jnp.allclose(out3, ref3, atol=1e-5, rtol=1e-5)

    print("KERNEL_OK")
</pallas_src>

<mosaic_0001>
module attributes {stable_mosaic.version = 11 : i64} {
  func.func @_critic_kernel(%arg0: i32, %arg1: memref<8x16xf32, #tpu.memory_space<vmem>>, %arg2: memref<8x4xf32, #tpu.memory_space<vmem>>, %arg3: memref<16x128xf32, #tpu.memory_space<vmem>>, %arg4: memref<4x128xf32, #tpu.memory_space<vmem>>, %arg5: memref<264x128xf32, #tpu.memory_space<vmem>>, %arg6: memref<8x1xf32, #tpu.memory_space<vmem>>) attributes {dimension_semantics = [#tpu.dimension_semantics<parallel>], iteration_bounds = array<i64: 1>, scalar_prefetch = 0 : i64, scratch_operands = 0 : i64, tpu.core_type = #tpu.core_type<tc>, window_params = [{transform_indices = @transform_0, window_bounds = array<i64: 8, 16>}, {transform_indices = @transform_1, window_bounds = array<i64: 8, 4>}, {pipeline_mode = #tpu.pipeline_mode<synchronous>, transform_indices = @transform_2, window_bounds = array<i64: 16, 128>}, {pipeline_mode = #tpu.pipeline_mode<synchronous>, transform_indices = @transform_3, window_bounds = array<i64: 4, 128>}, {pipeline_mode = #tpu.pipeline_mode<synchronous>, transform_indices = @transform_4, window_bounds = array<i64: 264, 128>}, {transform_indices = @transform_5, window_bounds = array<i64: 8, 1>}]} {
    %c0 = arith.constant 0 : index
    %c0_0 = arith.constant 0 : index
    %0 = vector.load %arg1[%c0, %c0_0] : memref<8x16xf32, #tpu.memory_space<vmem>>, vector<8x16xf32>
    %c0_1 = arith.constant 0 : index
    %c0_2 = arith.constant 0 : index
    %1 = vector.load %arg2[%c0_1, %c0_2] : memref<8x4xf32, #tpu.memory_space<vmem>>, vector<8x4xf32>
    %c0_3 = arith.constant 0 : index
    %c0_4 = arith.constant 0 : index
    %2 = vector.load %arg3[%c0_3, %c0_4] : memref<16x128xf32, #tpu.memory_space<vmem>>, vector<16x128xf32>
    %c0_5 = arith.constant 0 : index
    %c0_6 = arith.constant 0 : index
    %3 = vector.load %arg4[%c0_5, %c0_6] : memref<4x128xf32, #tpu.memory_space<vmem>>, vector<4x128xf32>
    %c0_7 = arith.constant 0 : index
    %c0_8 = arith.constant 0 : index
    %4 = vector.load %arg5[%c0_7, %c0_8] : memref<264x128xf32, #tpu.memory_space<vmem>>, vector<128x128xf32>
    %c128 = arith.constant 128 : index
    %c0_9 = arith.constant 0 : index
    %5 = vector.load %arg5[%c128, %c0_9] : memref<264x128xf32, #tpu.memory_space<vmem>>, vector<128x128xf32>
    %c256 = arith.constant 256 : index
    %c0_10 = arith.constant 0 : index
    %6 = vector.load %arg5[%c256, %c0_10] : memref<264x128xf32, #tpu.memory_space<vmem>>, vector<1x128xf32>
    %c257 = arith.constant 257 : index
    %c0_11 = arith.constant 0 : index
    %7 = vector.load %arg5[%c257, %c0_11] : memref<264x128xf32, #tpu.memory_space<vmem>>, vector<1x128xf32>
    %c258 = arith.constant 258 : index
    %c0_12 = arith.constant 0 : index
    %8 = vector.load %arg5[%c258, %c0_12] : memref<264x128xf32, #tpu.memory_space<vmem>>, vector<1x128xf32>
    %c259 = arith.constant 259 : index
    %c0_13 = arith.constant 0 : index
    %9 = vector.load %arg5[%c259, %c0_13] : memref<264x128xf32, #tpu.memory_space<vmem>>, vector<1x128xf32>
    %c260 = arith.constant 260 : index
    %c0_14 = arith.constant 0 : index
    %10 = vector.load %arg5[%c260, %c0_14] : memref<264x128xf32, #tpu.memory_space<vmem>>, vector<1x1xf32>
    %cst = arith.constant dense<0.000000e+00> : vector<8x128xf32>
    %11 = tpu.matmul %0, %2, %cst {dimension_numbers = #tpu.dot_dimension_numbers<[1], [0], [0], [1], [0, 0, 1, 1], [], []>} : vector<8x16xf32>, vector<16x128xf32>, vector<8x128xf32> -> vector<8x128xf32>
    %cst_15 = arith.constant dense<0.000000e+00> : vector<8x128xf32>
    %12 = tpu.matmul %1, %3, %cst_15 {dimension_numbers = #tpu.dot_dimension_numbers<[1], [0], [0], [1], [0, 0, 1, 1], [], []>} : vector<8x4xf32>, vector<4x128xf32>, vector<8x128xf32> -> vector<8x128xf32>
    %13 = arith.addf %11, %12 : vector<8x128xf32>
    %14 = vector.broadcast %6 : vector<1x128xf32> to vector<8x128xf32>
    %15 = arith.addf %13, %14 : vector<8x128xf32>
    %cst_16 = arith.constant 0.000000e+00 : f32
    %16 = vector.broadcast %cst_16 : f32 to vector<8x128xf32>
    %17 = arith.maximumf %15, %16 : vector<8x128xf32>
    %cst_17 = arith.constant dense<0.000000e+00> : vector<8x128xf32>
    %18 = tpu.matmul %17, %4, %cst_17 {dimension_numbers = #tpu.dot_dimension_numbers<[1], [0], [0], [1], [0, 0, 1, 1], [], []>} : vector<8x128xf32>, vector<128x128xf32>, vector<8x128xf32> -> vector<8x128xf32>
    %19 = vector.broadcast %7 : vector<1x128xf32> to vector<8x128xf32>
    %20 = arith.addf %18, %19 : vector<8x128xf32>
    %cst_18 = arith.constant 0.000000e+00 : f32
    %21 = vector.broadcast %cst_18 : f32 to vector<8x128xf32>
    %22 = arith.maximumf %20, %21 : vector<8x128xf32>
    %cst_19 = arith.constant dense<0.000000e+00> : vector<8x128xf32>
    %23 = tpu.matmul %22, %5, %cst_19 {dimension_numbers = #tpu.dot_dimension_numbers<[1], [0], [0], [1], [0, 0, 1, 1], [], []>} : vector<8x128xf32>, vector<128x128xf32>, vector<8x128xf32> -> vector<8x128xf32>
    %24 = vector.broadcast %8 : vector<1x128xf32> to vector<8x128xf32>
    %25 = arith.addf %23, %24 : vector<8x128xf32>
    %cst_20 = arith.constant 0.000000e+00 : f32
    %26 = vector.broadcast %cst_20 : f32 to vector<8x128xf32>
    %27 = arith.maximumf %25, %26 : vector<8x128xf32>
    %28 = vector.broadcast %9 : vector<1x128xf32> to vector<8x128xf32>
    %29 = arith.mulf %27, %28 : vector<8x128xf32>
    %cst_21 = arith.constant dense<0.000000e+00> : vector<8xf32>
    %30 = vector.multi_reduction <add>, %29, %cst_21 [1] : vector<8x128xf32> to vector<8xf32>
    %31 = vector.shape_cast %30 : vector<8xf32> to vector<8x1xf32>
    %32 = vector.broadcast %10 : vector<1x1xf32> to vector<8x1xf32>
    %33 = arith.addf %31, %32 : vector<8x1xf32>
    %c0_22 = arith.constant 0 : index
    %c0_23 = arith.constant 0 : index
    %34 = vector.load %arg6[%c0_22, %c0_23] : memref<8x1xf32, #tpu.memory_space<vmem>>, vector<8x1xf32>
    tpu.vector_store %arg6[%c0_22, %c0_23], %33 {strides = array<i32>} : memref<8x1xf32, #tpu.memory_space<vmem>>, vector<8x1xf32>,
    return
  }
  func.func @transform_0(%arg0: i32) -> (i32, i32) {
    %c0_i32 = arith.constant 0 : i32
    %c0_i32_0 = arith.constant 0 : i32
    return %arg0, %c0_i32 : i32, i32
  }
  func.func @transform_1(%arg0: i32) -> (i32, i32) {
    %c0_i32 = arith.constant 0 : i32
    %c0_i32_0 = arith.constant 0 : i32
    return %arg0, %c0_i32 : i32, i32
  }
  func.func @transform_2(%arg0: i32) -> (i32, i32) {
    %c0_i32 = arith.constant 0 : i32
    %c0_i32_0 = arith.constant 0 : i32
    %c0_i32_1 = arith.constant 0 : i32
    return %c0_i32, %c0_i32_0 : i32, i32
  }
  func.func @transform_3(%arg0: i32) -> (i32, i32) {
    %c0_i32 = arith.constant 0 : i32
    %c0_i32_0 = arith.constant 0 : i32
    %c0_i32_1 = arith.constant 0 : i32
    return %c0_i32, %c0_i32_0 : i32, i32
  }
  func.func @transform_4(%arg0: i32) -> (i32, i32) {
    %c0_i32 = arith.constant 0 : i32
    %c0_i32_0 = arith.constant 0 : i32
    %c0_i32_1 = arith.constant 0 : i32
    return %c0_i32, %c0_i32_0 : i32, i32
  }
  func.func @transform_5(%arg0: i32) -> (i32, i32) {
    %c0_i32 = arith.constant 0 : i32
    %c0_i32_0 = arith.constant 0 : i32
    return %arg0, %c0_i32 : i32, i32
  }
}

</mosaic_0001>

<bundles_post_ra>
// kernel: critic_forward.1
= control target key start
LH: loop header
LB: loop body
LE: loop exit
PB: predicated region body
PF: predicated region fallthrough
CT: control target
= control target key end

     0   :  { %vm66_vm0 = vcmask 1043456   ;;  %v571_v0 = vmov 0.0|0.0   ;;  %v572_v1 = vmov 0.0   ;;  %vm62_vm1 = vcmask 31744   ;;  %s754_s2 = inlined_call_operand.vmem [shape: f32[16,128], index: 2, kind: input, shape index: {}]   ;;  %s755_s3 = inlined_call_operand.vmem [shape: f32[4,128], index: 3, kind: input, shape index: {}]   ;;  %s756_s1 = inlined_call_operand.vmem [shape: f32[8,4], index: 1, kind: input, shape index: {}]   ;;  %s757_s4 = inlined_call_operand.vmem [shape: f32[264,128], index: 4, kind: input, shape index: {}]   ;;  %s758_s0 = inlined_call_operand.vmem [shape: f32[8,16], index: 0, kind: input, shape index: {}]   ;;  %s759_s5 = inlined_call_operand.vmem [shape: f32[8,1], index: 5, kind: output, shape index: {}]  }
   0x1   :  { %517 = vmatprep.subr.bf16.mxu1 %v571_v0  ;;  %435 = vmatprep.subr.mxu0 %v572_v1  ;;  %v22_v2 = vld [vmem:[%s754_s2] sm:$0xff]  ;;  %v23_v3 = vld [vmem:[%s754_s2 + $0x8] sm:$0xff]  ;;  %vm573_vm2 = vmmov 0   ;;  %v27_v9 = vld [vmem:[%s757_s4 + $0x10] sm:$0xff]  ;;  %vm140_vm3 = vcmask 130048   ;;  %vm382_vm4 = vcmask 7168  }
   0x2   :  { %v24_v4 = vld [vmem:[%s755_s3] sm:$0xf]  ;;  %v518_v5 = vpack.c.bf16 %v23_v3, %v22_v2  ;;  %437 = vmatprep.mubr.msk.f32.mxu0 %vm573_vm2, %v572_v1  ;;  %444 = vmatprep.mubr.msk.f32.mxu1 %vm573_vm2, %v572_v1  ;;  %v26_v8 = vld [vmem:[%s757_s4 + $0x8] sm:$0xff]  ;;  %v28_v10 = vld [vmem:[%s757_s4 + $0x18] sm:$0xff] }
   0x3   :  { %436 = vmatpush3.msk.msra.mxu0 %vm66_vm0, %v24_v4  ;;  %v21_v6 = vld [vmem:[%s756_s1] sm:$0xff]  ;;  %v524_v13 = vpack.c.bf16 %v28_v10, %v27_v9  ;;  %v30_v15 = vld [vmem:[%s757_s4 + $0x28] sm:$0xff]  ;;  %v31_v17 = vld [vmem:[%s757_s4 + $0x30] sm:$0xff] }
   0x4   :  { %v25_v7 = vld [vmem:[%s757_s4] sm:$0xff]  ;;  %438 = vmatmul.mubr.msk.f32.vlgmr.msra.gmra.mrb[0].mxu0 %vm62_vm1, %v21_v6  ;;  %519 = vmatpush3.bf16.msra.mxu1 %v518_v5  ;;  %v32_v18 = vld [vmem:[%s757_s4 + $0x38] sm:$0xff]  ;;  %v34_v21 = vld [vmem:[%s757_s4 + $0x48] sm:$0xff] }
   0x5   :  { %v20_v11 = vld [vmem:[%s758_s0] sm:$0xff]  ;;  %520 = vmatprep.subr.bf16.mxu0 %v571_v0  ;;  %v521_v12 = vpack.c.bf16 %v26_v8, %v25_v7  ;;  %479 = vmatprep.mubr.msk.f32.mxu0 %vm573_vm2, %v572_v1  ;;  %v530_v19 = vpack.c.bf16 %v32_v18, %v31_v17  ;;  %v35_v23 = vld [vmem:[%s757_s4 + $0x50] sm:$0xff]  ;;  %v36_v24 = vld [vmem:[%s757_s4 + $0x58] sm:$0xff] }
   0x6   :  { %544 = vmatprep.subr.bf16.mxu1 %v571_v0  ;;  %v29_v14 = vld [vmem:[%s757_s4 + $0x20] sm:$0xff]  ;;  %v536_v25 = vpack.c.bf16 %v36_v24, %v35_v23  ;;  %v38_v27 = vld [vmem:[%s757_s4 + $0x68] sm:$0xff]  ;;  %v39_v29 = vld [vmem:[%s757_s4 + $0x70] sm:$0xff] }
   0x7   :  { %522 = vmatpush3.bf16.msra.mxu0 %v521_v12  ;;  %445 = vmatmul.mubr.msk.f32.vlgmr.msra.gmra.mrb[0].mxu1 %vm140_vm3, %v20_v11  ;;  %v527_v16 = vpack.c.bf16 %v30_v15, %v29_v14  ;;  %v33_v20 = vld [vmem:[%s757_s4 + $0x40] sm:$0xff]  ;;  %v40_v30 = vld [vmem:[%s757_s4 + $0x78] sm:$0xff]  ;;  %v42_v33 = vld [vmem:[%s757_s4 + $0x88] sm:$0xff] }
   0x8   :  { %523 = vmatprep.subr.bf16.mxu0 %v571_v0  ;;  %514 = vmatprep.mubr.msk.f32.mxu1 %vm573_vm2, %v572_v1  ;;  %v533_v22 = vpack.c.bf16 %v34_v21, %v33_v20  ;;  %v37_v26 = vld [vmem:[%s757_s4 + $0x60] sm:$0xff]  ;;  %v542_v31 = vpack.c.bf16 %v40_v30, %v39_v29  ;;  %v43_v34 = vld [vmem:[%s757_s4 + $0x90] sm:$0xff]  ;;  %v44_v36 = vld [vmem:[%s757_s4 + $0x98] sm:$0xff] }
   0x9   :  { %v539_v28 = vpack.c.bf16 %v38_v27, %v37_v26  ;;  %v41_v32 = vld [vmem:[%s757_s4 + $0x80] sm:$0xff]  ;;  %v548_v37 = vpack.c.bf16 %v44_v36, %v43_v34  ;;  %v46_v39 = vld [vmem:[%s757_s4 + $0xa8] sm:$0xff]  ;;  %v47_v41 = vld [vmem:[%s757_s4 + $0xb0] sm:$0xff] }
   0xa   :  { %v545_v35 = vpack.c.bf16 %v42_v33, %v41_v32  ;;  %v45_v38 = vld [vmem:[%s757_s4 + $0xa0] sm:$0xff]  ;;  %v48_v42 = vld [vmem:[%s757_s4 + $0xb8] sm:$0xff]  ;;  %v50_v45 = vld [vmem:[%s757_s4 + $0xc8] sm:$0xff] }
   0xb   :  { %525 = vmatpush3.bf16.msra.mxu0 %v524_v13  ;;  %v551_v40 = vpack.c.bf16 %v46_v39, %v45_v38  ;;  %v554_v43 = vpack.c.bf16 %v48_v42, %v47_v41  ;;  %v49_v44 = vld [vmem:[%s757_s4 + $0xc0] sm:$0xff]  ;;  %v51_v47 = vld [vmem:[%s757_s4 + $0xd0] sm:$0xff]  ;;  %v52_v48 = vld [vmem:[%s757_s4 + $0xd8] sm:$0xff] }
   0xc   :  { %526 = vmatprep.subr.bf16.mxu0 %v571_v0  ;;  %546 = vmatpush3.bf16.msra.mxu1 %v545_v35  ;;  %v557_v46 = vpack.c.bf16 %v50_v45, %v49_v44  ;;  %v560_v49 = vpack.c.bf16 %v52_v48, %v51_v47  ;;  %v53_v50 = vld [vmem:[%s757_s4 + $0xe0] sm:$0xff]  ;;  %v54_v51 = vld [vmem:[%s757_s4 + $0xe8] sm:$0xff]  ;;  %v55_v61 = vld [vmem:[%s757_s4 + $0xf0] sm:$0xff] }
   0xd   :  { %547 = vmatprep.subr.bf16.mxu1 %v571_v0  ;;  %v563_v52 = vpack.c.bf16 %v54_v51, %v53_v50  ;;  %v391_v55 = vld [vmem:[%s757_s4 + $0x100] ss:$0 sm:$0xff]  ;;  %v56_v62 = vld [vmem:[%s757_s4 + $0xf8] sm:$0xff]  ;;  %v393_v5 = vld [vmem:[%s757_s4 + $0x102] ss:$0 sm:$0xff] }
   0xe   :  { %v566_v63 = vpack.c.bf16 %v56_v62, %v55_v61  ;;  %v394_v9 = vld [vmem:[%s757_s4 + $0x103] ss:$0 sm:$0xff]  ;;  %v395_v12 = vld [vmem:[%s757_s4 + $0x104] ss:$0 sm:$0xff] }
   0xf   :  { %528 = vmatpush3.bf16.msra.mxu0 %v527_v16 }
  0x10   :  { %529 = vmatprep.subr.bf16.mxu0 %v571_v0  ;;  %549 = vmatpush3.bf16.msra.mxu1 %v548_v37 }
  0x11   :  { %550 = vmatprep.subr.bf16.mxu1 %v571_v0 }
  0x13   :  { %531 = vmatpush3.bf16.msra.mxu0 %v530_v19 }
  0x14   :  { %532 = vmatprep.subr.bf16.mxu0 %v571_v0  ;;  %552 = vmatpush3.bf16.msra.mxu1 %v551_v40 }
  0x15   :  { %553 = vmatprep.subr.bf16.mxu1 %v571_v0 }
  0x17   :  { %534 = vmatpush3.bf16.msra.mxu0 %v533_v22 }
  0x18   :  { %535 = vmatprep.subr.bf16.mxu0 %v571_v0  ;;  %555 = vmatpush3.bf16.msra.mxu1 %v554_v43 }
  0x19   :  { %556 = vmatprep.subr.bf16.mxu1 %v571_v0 }
  0x1b   :  { %537 = vmatpush3.bf16.msra.mxu0 %v536_v25 }
  0x1c   :  { %538 = vmatprep.subr.bf16.mxu0 %v571_v0  ;;  %558 = vmatpush3.bf16.msra.mxu1 %v557_v46 }
  0x1d   :  { %559 = vmatprep.subr.bf16.mxu1 %v571_v0 }
  0x1f   :  { %540 = vmatpush3.bf16.msra.mxu0 %v539_v28 }
  0x20   :  { %541 = vmatprep.subr.bf16.mxu0 %v571_v0  ;;  %561 = vmatpush3.bf16.msra.mxu1 %v560_v49 }
  0x21   :  { %562 = vmatprep.subr.bf16.mxu1 %v571_v0 }
  0x23   :  { %543 = vmatpush3.bf16.msra.mxu0 %v542_v31 }
  0x24   :  { %564 = vmatpush3.bf16.msra.mxu1 %v563_v52 }
  0x25   :  { %565 = vmatprep.subr.bf16.mxu1 %v571_v0  ;;  %v392_v0 = vld [vmem:[%s757_s4 + $0x101] ss:$0 sm:$0xff] }
  0x28   :  { %567 = vmatpush3.bf16.msra.mxu1 %v566_v63 }
  0xd7   :  { %v136_v53 = vpop.f32.mrb[0].mxu0 }
  0xd8   :  { %v439_v54 = vpop.f32.mrb[1].mxu0 }
  0xda   :  { %v210_v56 = vpop.f32.mrb[0].mxu1 }
  0xdb   :  { %v211_v57 = vadd.f32 %v210_v56, %v136_v53  ;;  %v446_v58 = vpop.f32.mrb[1].mxu1 }
  0xdd   :  { %v218_v59 = vadd.f32 %v391_v55, %v211_v57 }
  0xdf   :  { %v219_v60 = vmax.f32 %v218_v59, 0.0 }
  0xe1   :  { %480 = vmatmul.mubr.f32.vlgmr.msra.gmra.mrb[2].mxu0 %v219_v60 }
 0x1b4   :  { %v290_v1 = vpop.f32.mrb[2].mxu0 }
 0x1b5   :  { %v291_v2 = vadd.f32 %v392_v0, %v290_v1  ;;  %v481_v3 = vpop.f32.mrb[3].mxu0 }
 0x1b7   :  { %v294_v4 = vmax.f32 %v291_v2, 0.0 }
 0x1b9   :  { %515 = vmatmul.mubr.f32.vlgmr.msra.gmra.mrb[2].mxu1 %v294_v4 }
 0x28c   :  { %v365_v6 = vpop.f32.mrb[2].mxu1 }
 0x28d   :  { %v366_v7 = vadd.f32 %v393_v5, %v365_v6  ;;  %v516_v8 = vpop.f32.mrb[3].mxu1 }
 0x28f   :  { %v369_v10 = vmax.f32 %v366_v7, 0.0 }
 0x291   :  { %v374_v11 = vmul.f32 %v394_v9, %v369_v10 }
 0x293   :  { %375 = vadd.xlane.f32.xlu0 %v374_v11 }
 0x320   :  { %v376_v13 = vpop.xlane.xlu0 %375 }
 0x321   :  { %v381_v14 = vadd.f32 %v395_v12, %v376_v13 }
 0x323   :  { %383 = vst.msk [vmem:[%s759_s5] sm:$0xff] %vm382_vm4, %v381_v14 }

</bundles_post_ra>
